<compile_context>
chip_gen: v6e
topology: v6e:2x2x1
jax: 0.10.0
libtpu: 0.0.40
codegen_flags: <defaults>
</compile_context>

<pallas_src>
import jax
import jax.numpy as jnp
from jax.experimental import pallas as pl
from jax.experimental.pallas import tpu as pltpu

_LANE = 128
_SUBLANE = 8


def _round_up(x, m):
    return (x + m - 1) // m * m


def _bma_kernel(x_ref, w1_ref, w2_ref, b2_ref, s_ref, ss_ref):
    """One grid step: forward pass of `mb` models, accumulated into the
    per-split sum / sum-of-squares slabs (one Dout-wide lane group per model)."""
    k = pl.program_id(1)

    @pl.when(k == 0)
    def _init():
        s_ref[...] = jnp.zeros_like(s_ref)
        ss_ref[...] = jnp.zeros_like(ss_ref)

    # Layer 1: [B, Kp] @ [Kp, mb*H]  (b1 folded in via the ones column on X).
    hidden = jnp.maximum(
        jnp.dot(x_ref[...], w1_ref[...], preferred_element_type=jnp.float32),
        0.0)

    # Layer 2: one block-diagonal matmul [B, mb*H] @ [mb*H, w_lanes]; model i's
    # prediction lands in lane group i.  Off-diagonal W2 entries are zero, so
    # padded lanes stay exactly zero (sum and sumsq both).
    preds = jnp.dot(hidden.astype(w2_ref.dtype), w2_ref[0],
                    preferred_element_type=jnp.float32) + b2_ref[0]

    s_ref[0] += preds
    ss_ref[0] += preds * preds


def bma_mlp(x, w1, b1, w2, b2, *, max_models_per_block=32,
            weight_dtype=jnp.float32):
    """Mean / unbiased variance over an ensemble of 2-layer ReLU MLPs.

    x  : [B, D_in]
    w1 : [M, D_in, H],  b1 : [M, 1, H]
    w2 : [M, H, D_out], b2 : [M, 1, D_out]
    returns (mean [B, D_out], var [B, D_out])  -- var uses correction=1.
    NOTE: M == 1 yields inf/nan variance, matching torch.var(correction=1).
    """
    M, D_in, H = w1.shape
    D_out = w2.shape[2]
    B = x.shape[0]
    isz = jnp.dtype(weight_dtype).itemsize

    B_p = _round_up(B, _SUBLANE)                 # sublane-pad the batch
    K_p = _round_up(D_in + 1, _SUBLANE)          # layer-1 contraction dim

    # ---- generation-aware VMEM budget --------------------------------------
    try:
        phys_vmem = pltpu.get_tpu_info().vmem_capacity_bytes
    except Exception:                            # interpret mode / old runtime
        phys_vmem = 64 * 1024 * 1024
    vmem_limit = int(min(phys_vmem * 3 // 4, 96 * 1024 * 1024))
    weight_budget = vmem_limit // 2              # for double-buffered weights

    def block_weight_bytes(mb):
        w_lanes = _round_up(mb * D_out, _LANE)
        return (K_p * mb * H + mb * H * w_lanes + w_lanes) * isz

    # ---- pick models-per-block mb -------------------------------------------
    # Prefer mb*H a multiple of 256 (v6e/v7x 256x256 MXU), then 128 (lanes /
    # v5e MXU); fall back to the smallest lane-legal divisor if nothing fits.
    divisors = [d for d in range(1, M + 1) if M % d == 0]

    def lane_legal(mb, mult):
        return (mb * H) % mult == 0 or mb == M

    mb = None
    for mult in (2 * _LANE, _LANE):
        fitting = [d for d in divisors
                   if d <= max_models_per_block and lane_legal(d, mult)
                   and 2 * block_weight_bytes(d) <= weight_budget]
        if fitting:
            mb = max(fitting)
            break
    if mb is None:
        legal = [d for d in divisors if lane_legal(d, _LANE)]
        fitting = [d for d in legal if 2 * block_weight_bytes(d) <= weight_budget]
        mb = max(fitting) if fitting else min(legal)

    n_blocks = M // mb
    w_lanes = _round_up(mb * D_out, _LANE)

    # Split model blocks across two "parallel" grid slots (v7x megacore); the
    # per-split partial sums are added in the wrapper epilogue.  Harmless on
    # single-core chips (just two resident output slabs).
    n_splits = 2 if (n_blocks >= 2 and n_blocks % 2 == 0) else 1
    bps = n_blocks // n_splits

    # ---- wrapper-side packing (pure layout work) ----------------------------
    f32 = jnp.float32
    # X: ones column folds b1; pad batch to a sublane multiple, K to K_p.
    x_aug = jnp.concatenate([x.astype(f32), jnp.ones((B, 1), f32)], axis=1)
    x_aug = jnp.pad(x_aug, ((0, B_p - B), (0, K_p - (D_in + 1))))

    # W1 | b1 packed lane-dense: [K_p, M*H], column m*H + h <- model m.
    w1_pk = jnp.transpose(w1, (1, 0, 2)).reshape(D_in, M * H)
    w1_pk = jnp.concatenate([w1_pk, b1.reshape(1, M * H)], axis=0)
    w1_pk = jnp.pad(w1_pk, ((0, K_p - (D_in + 1)), (0, 0)))

    # Block-diagonal W2 per model block: [n_blocks, mb*H, w_lanes] with model i
    # of the block occupying rows i*H:(i+1)*H and lanes i*D_out:(i+1)*D_out.
    w2_blk = w2.astype(f32).reshape(n_blocks, mb, H, D_out)
    eye = jnp.eye(mb, dtype=f32)
    w2_bd = jnp.einsum("bihd,ij->bihjd", w2_blk, eye)
    w2_bd = w2_bd.reshape(n_blocks, mb * H, mb * D_out)
    w2_bd = jnp.pad(w2_bd, ((0, 0), (0, 0), (0, w_lanes - mb * D_out)))

    # b2 packed along the same lane groups: [n_blocks, 1, w_lanes].
    b2_pk = b2.astype(f32).reshape(n_blocks, 1, mb * D_out)
    b2_pk = jnp.pad(b2_pk, ((0, 0), (0, 0), (0, w_lanes - mb * D_out)))

    x_aug = x_aug.astype(weight_dtype)
    w1_pk = w1_pk.astype(weight_dtype)
    w2_bd = w2_bd.astype(weight_dtype)
    b2_pk = b2_pk.astype(weight_dtype)

    # TODO(synk): for production batch sizes, add a leading "parallel" grid
    # axis tiling B (Bt ~ 256-512) so the layer-1 MXU M dimension is dense.
    s_out, ss_out = pl.pallas_call(
        _bma_kernel,
        out_shape=(jax.ShapeDtypeStruct((n_splits, B_p, w_lanes), jnp.float32),
                   jax.ShapeDtypeStruct((n_splits, B_p, w_lanes), jnp.float32)),
        grid_spec=pltpu.PrefetchScalarGridSpec(
            num_scalar_prefetch=0,
            grid=(n_splits, bps),
            in_specs=[
                pl.BlockSpec((B_p, K_p), lambda c, k: (0, 0)),            # X
                pl.BlockSpec((K_p, mb * H),
                             lambda c, k: (0, c * bps + k)),              # W1|b1
                pl.BlockSpec((1, mb * H, w_lanes),
                             lambda c, k: (c * bps + k, 0, 0)),           # W2 bd
                pl.BlockSpec((1, 1, w_lanes),
                             lambda c, k: (c * bps + k, 0, 0)),           # b2
            ],
            out_specs=(pl.BlockSpec((1, B_p, w_lanes), lambda c, k: (c, 0, 0)),
                       pl.BlockSpec((1, B_p, w_lanes), lambda c, k: (c, 0, 0))),
        ),
        compiler_params=pltpu.CompilerParams(
            dimension_semantics=("parallel", "arbitrary"),
            vmem_limit_bytes=vmem_limit,
        ),
    )(x_aug, w1_pk, w2_bd, b2_pk)

    # ---- tiny wrapper epilogue: reduce model lane-groups, finalize ----------
    s = s_out.sum(axis=0)[:B, :mb * D_out].reshape(B, mb, D_out).sum(axis=1)
    ss = ss_out.sum(axis=0)[:B, :mb * D_out].reshape(B, mb, D_out).sum(axis=1)
    n = jnp.float32(M)
    mean = s / n
    # Unbiased variance (torch.var default, correction=1).  One-pass form,
    # clamped at 0 against f32 cancellation when |mean| >> std.
    var = jnp.maximum((ss - n * mean * mean) / (n - 1.0), 0.0)
    return mean, var


def reference(x, w1, b1, w2, b2):
    # Pure-JAX reference matching the torch module semantics.
    h = jnp.maximum(jnp.einsum("bd,mdh->mbh", x, w1) + b1, 0.0)
    preds = jnp.einsum("mbh,mho->mbo", h, w2) + b2
    return preds.mean(axis=0), preds.var(axis=0, ddof=1)


if __name__ == "__main__":
    key = jax.random.PRNGKey(0)
    M, B, D_in, H, D_out = 4, 8, 16, 32, 8

    kx, k1, k2, k3, k4 = jax.random.split(key, 5)
    x = jax.random.normal(kx, (B, D_in), dtype=jnp.float32)
    w1 = jax.random.normal(k1, (M, D_in, H), dtype=jnp.float32) * 0.1
    b1 = jax.random.normal(k2, (M, 1, H), dtype=jnp.float32) * 0.1
    w2 = jax.random.normal(k3, (M, H, D_out), dtype=jnp.float32) * 0.1
    b2 = jax.random.normal(k4, (M, 1, D_out), dtype=jnp.float32) * 0.1

    mean, var = bma_mlp(x, w1, b1, w2, b2)
    jax.block_until_ready((mean, var))

    ref_mean, ref_var = reference(x, w1, b1, w2, b2)
    assert jnp.allclose(mean, ref_mean, atol=1e-5, rtol=1e-5), \
        float(jnp.max(jnp.abs(mean - ref_mean)))
    assert jnp.allclose(var, ref_var, atol=1e-5, rtol=1e-5), \
        float(jnp.max(jnp.abs(var - ref_var)))

    print("KERNEL_OK")
</pallas_src>

<mosaic_0001>
module attributes {stable_mosaic.version = 11 : i64} {
  func.func @_bma_kernel(%arg0: i32, %arg1: i32, %arg2: memref<8x24xf32, #tpu.memory_space<vmem>>, %arg3: memref<24x128xf32, #tpu.memory_space<vmem>>, %arg4: memref<1x128x128xf32, #tpu.memory_space<vmem>>, %arg5: memref<1x1x128xf32, #tpu.memory_space<vmem>>, %arg6: memref<1x8x128xf32, #tpu.memory_space<vmem>>, %arg7: memref<1x8x128xf32, #tpu.memory_space<vmem>>) attributes {dimension_semantics = [#tpu.dimension_semantics<parallel>, #tpu.dimension_semantics<arbitrary>], iteration_bounds = array<i64: 1, 1>, scalar_prefetch = 0 : i64, scratch_operands = 0 : i64, tpu.core_type = #tpu.core_type<tc>, window_params = [{pipeline_mode = #tpu.pipeline_mode<synchronous>, transform_indices = @transform_0, window_bounds = array<i64: 8, 24>}, {transform_indices = @transform_1, window_bounds = array<i64: 24, 128>}, {transform_indices = @transform_2, window_bounds = array<i64: 1, 128, 128>}, {transform_indices = @transform_3, window_bounds = array<i64: 1, 1, 128>}, {transform_indices = @transform_4, window_bounds = array<i64: 1, 8, 128>}, {transform_indices = @transform_5, window_bounds = array<i64: 1, 8, 128>}]} {
    %c0_i32 = arith.constant 0 : i32
    %0 = arith.cmpi eq, %arg1, %c0_i32 : i32
    %1 = arith.extui %0 : i1 to i32
    %c0_i32_0 = arith.constant 0 : i32
    %2 = arith.cmpi ne, %1, %c0_i32_0 : i32
    scf.if %2 {
      %cst_24 = arith.constant 0.000000e+00 : f32
      %28 = vector.broadcast %cst_24 : f32 to vector<1x8x128xf32>
      %c0_25 = arith.constant 0 : index
      %c0_26 = arith.constant 0 : index
      %c0_27 = arith.constant 0 : index
      %29 = vector.load %arg6[%c0_25, %c0_26, %c0_27] : memref<1x8x128xf32, #tpu.memory_space<vmem>>, vector<1x8x128xf32>
      tpu.vector_store %arg6[%c0_25, %c0_26, %c0_27], %28 {strides = array<i32>} : memref<1x8x128xf32, #tpu.memory_space<vmem>>, vector<1x8x128xf32>,
      %cst_28 = arith.constant 0.000000e+00 : f32
      %30 = vector.broadcast %cst_28 : f32 to vector<1x8x128xf32>
      %c0_29 = arith.constant 0 : index
      %c0_30 = arith.constant 0 : index
      %c0_31 = arith.constant 0 : index
      %31 = vector.load %arg7[%c0_29, %c0_30, %c0_31] : memref<1x8x128xf32, #tpu.memory_space<vmem>>, vector<1x8x128xf32>
      tpu.vector_store %arg7[%c0_29, %c0_30, %c0_31], %30 {strides = array<i32>} : memref<1x8x128xf32, #tpu.memory_space<vmem>>, vector<1x8x128xf32>,
    } else {
    }
    %c0 = arith.constant 0 : index
    %c0_1 = arith.constant 0 : index
    %3 = vector.load %arg2[%c0, %c0_1] : memref<8x24xf32, #tpu.memory_space<vmem>>, vector<8x24xf32>
    %c0_2 = arith.constant 0 : index
    %c0_3 = arith.constant 0 : index
    %4 = vector.load %arg3[%c0_2, %c0_3] : memref<24x128xf32, #tpu.memory_space<vmem>>, vector<24x128xf32>
    %cst = arith.constant dense<0.000000e+00> : vector<8x128xf32>
    %5 = tpu.matmul %3, %4, %cst {dimension_numbers = #tpu.dot_dimension_numbers<[1], [0], [0], [1], [0, 0, 1, 1], [], []>} : vector<8x24xf32>, vector<24x128xf32>, vector<8x128xf32> -> vector<8x128xf32>
    %cst_4 = arith.constant 0.000000e+00 : f32
    %6 = vector.broadcast %cst_4 : f32 to vector<8x128xf32>
    %7 = arith.maximumf %5, %6 : vector<8x128xf32>
    %c0_5 = arith.constant 0 : index
    %c0_6 = arith.constant 0 : index
    %c0_7 = arith.constant 0 : index
    %8 = vector.load %arg4[%c0_5, %c0_6, %c0_7] : memref<1x128x128xf32, #tpu.memory_space<vmem>>, vector<1x128x128xf32>
    %9 = vector.shape_cast %8 : vector<1x128x128xf32> to vector<128x128xf32>
    %cst_8 = arith.constant dense<0.000000e+00> : vector<8x128xf32>
    %10 = tpu.matmul %7, %9, %cst_8 {dimension_numbers = #tpu.dot_dimension_numbers<[1], [0], [0], [1], [0, 0, 1, 1], [], []>} : vector<8x128xf32>, vector<128x128xf32>, vector<8x128xf32> -> vector<8x128xf32>
    %c0_9 = arith.constant 0 : index
    %c0_10 = arith.constant 0 : index
    %c0_11 = arith.constant 0 : index
    %11 = vector.load %arg5[%c0_9, %c0_10, %c0_11] : memref<1x1x128xf32, #tpu.memory_space<vmem>>, vector<1x1x128xf32>
    %12 = vector.shape_cast %11 : vector<1x1x128xf32> to vector<1x128xf32>
    %13 = vector.broadcast %12 : vector<1x128xf32> to vector<8x128xf32>
    %14 = arith.addf %10, %13 : vector<8x128xf32>
    %c0_12 = arith.constant 0 : index
    %c0_13 = arith.constant 0 : index
    %c0_14 = arith.constant 0 : index
    %15 = vector.load %arg6[%c0_12, %c0_13, %c0_14] : memref<1x8x128xf32, #tpu.memory_space<vmem>>, vector<1x8x128xf32>
    %16 = vector.shape_cast %15 : vector<1x8x128xf32> to vector<8x128xf32>
    %17 = arith.addf %16, %14 : vector<8x128xf32>
    %c0_15 = arith.constant 0 : index
    %c0_16 = arith.constant 0 : index
    %c0_17 = arith.constant 0 : index
    %18 = vector.load %arg6[%c0_15, %c0_16, %c0_17] : memref<1x8x128xf32, #tpu.memory_space<vmem>>, vector<1x8x128xf32>
    %19 = vector.shape_cast %18 : vector<1x8x128xf32> to vector<8x128xf32>
    %20 = vector.shape_cast %17 : vector<8x128xf32> to vector<1x8x128xf32>
    tpu.vector_store %arg6[%c0_15, %c0_16, %c0_17], %20 {strides = array<i32>} : memref<1x8x128xf32, #tpu.memory_space<vmem>>, vector<1x8x128xf32>,
    %c0_18 = arith.constant 0 : index
    %c0_19 = arith.constant 0 : index
    %c0_20 = arith.constant 0 : index
    %21 = vector.load %arg7[%c0_18, %c0_19, %c0_20] : memref<1x8x128xf32, #tpu.memory_space<vmem>>, vector<1x8x128xf32>
    %22 = vector.shape_cast %21 : vector<1x8x128xf32> to vector<8x128xf32>
    %23 = arith.mulf %14, %14 : vector<8x128xf32>
    %24 = arith.addf %22, %23 : vector<8x128xf32>
    %c0_21 = arith.constant 0 : index
    %c0_22 = arith.constant 0 : index
    %c0_23 = arith.constant 0 : index
    %25 = vector.load %arg7[%c0_21, %c0_22, %c0_23] : memref<1x8x128xf32, #tpu.memory_space<vmem>>, vector<1x8x128xf32>
    %26 = vector.shape_cast %25 : vector<1x8x128xf32> to vector<8x128xf32>
    %27 = vector.shape_cast %24 : vector<8x128xf32> to vector<1x8x128xf32>
    tpu.vector_store %arg7[%c0_21, %c0_22, %c0_23], %27 {strides = array<i32>} : memref<1x8x128xf32, #tpu.memory_space<vmem>>, vector<1x8x128xf32>,
    return
  }
  func.func @transform_0(%arg0: i32, %arg1: i32) -> (i32, i32) {
    %c0_i32 = arith.constant 0 : i32
    %c0_i32_0 = arith.constant 0 : i32
    %c0_i32_1 = arith.constant 0 : i32
    return %c0_i32, %c0_i32_0 : i32, i32
  }
  func.func @transform_1(%arg0: i32, %arg1: i32) -> (i32, i32) {
    %c1_i32 = arith.constant 1 : i32
    %0 = arith.muli %arg0, %c1_i32 : i32
    %1 = arith.addi %0, %arg1 : i32
    %c0_i32 = arith.constant 0 : i32
    %c0_i32_0 = arith.constant 0 : i32
    return %c0_i32, %1 : i32, i32
  }
  func.func @transform_2(%arg0: i32, %arg1: i32) -> (i32, i32, i32) {
    %c1_i32 = arith.constant 1 : i32
    %0 = arith.muli %arg0, %c1_i32 : i32
    %1 = arith.addi %0, %arg1 : i32
    %c0_i32 = arith.constant 0 : i32
    %c0_i32_0 = arith.constant 0 : i32
    %c0_i32_1 = arith.constant 0 : i32
    return %1, %c0_i32, %c0_i32_0 : i32, i32, i32
  }
  func.func @transform_3(%arg0: i32, %arg1: i32) -> (i32, i32, i32) {
    %c1_i32 = arith.constant 1 : i32
    %0 = arith.muli %arg0, %c1_i32 : i32
    %1 = arith.addi %0, %arg1 : i32
    %c0_i32 = arith.constant 0 : i32
    %c0_i32_0 = arith.constant 0 : i32
    %c0_i32_1 = arith.constant 0 : i32
    return %1, %c0_i32, %c0_i32_0 : i32, i32, i32
  }
  func.func @transform_4(%arg0: i32, %arg1: i32) -> (i32, i32, i32) {
    %c0_i32 = arith.constant 0 : i32
    %c0_i32_0 = arith.constant 0 : i32
    %c0_i32_1 = arith.constant 0 : i32
    return %arg0, %c0_i32, %c0_i32_0 : i32, i32, i32
  }
  func.func @transform_5(%arg0: i32, %arg1: i32) -> (i32, i32, i32) {
    %c0_i32 = arith.constant 0 : i32
    %c0_i32_0 = arith.constant 0 : i32
    %c0_i32_1 = arith.constant 0 : i32
    return %arg0, %c0_i32, %c0_i32_0 : i32, i32, i32
  }
}

</mosaic_0001>

<bundles_post_ra>
// kernel: tpu_custom_call.1
= control target key start
LH: loop header
LB: loop body
LE: loop exit
PB: predicated region body
PF: predicated region fallthrough
CT: control target
= control target key end

     0   :  { %11 = vsyncpa [#allocation3], 0  ;;  %s542_s0 = inlined_call_operand.hbm [shape: f32[8,24], index: 0, kind: input, shape index: {}]   ;;  %s543_s1 = inlined_call_operand.hbm [shape: f32[24,128], index: 1, kind: input, shape index: {}]   ;;  %s544_s2 = inlined_call_operand.hbm [shape: f32[1,128,128], index: 2, kind: input, shape index: {}]   ;;  %s545_s3 = inlined_call_operand.vmem [shape: f32[1,1,128], index: 3, kind: input, shape index: {}]   ;;  %s546_s4 = inlined_call_operand.hbm [shape: f32[1,8,128], index: 4, kind: output, shape index: {0}]   ;;  %s547_s5 = inlined_call_operand.hbm [shape: f32[1,8,128], index: 5, kind: output, shape index: {1}]  }
   0x1   :  { %12 = vsyncpa [#allocation6], 0 }
   0x2   :  { %13 = vsyncpa [#allocation4], 0 }
   0x3   :  { %14 = vsyncpa [#allocation10], 0  ;;  %s485_s18 = smov [#allocation5]  }
   0x4   :  { %s33_s19 = sshll.u32 %s485_s18, 4  ;;  %s34_s19 = int_to_ptr.vmem [resolvable:$true] %s33_s19 }
   0x5   :  { %s385_s20 = scalar_lea.vmem %s34_s19, 384  ;;  %p390_p1 = scmp.lt.s32.totalorder %s34_s19, %s34_s19 }
   0x6   :  { %p386_p0 = scmp.ne.s32.totalorder %s34_s19, %s385_s20  ;;  %p391_p2 = scmp.lt.s32.totalorder %s385_s20, %s385_s20 }
   0x8   :  { %p392_p3 = por %p391_p2, %p390_p1 }
   0xa   :  { %p393_p4 = pnand %p392_p3, %p386_p0 }
   0xc   :  { %396 = shalt.err (!%p393_p4)
}
   0xd   :  { %s486_s21 = smov 128   ;;  %s487_s22 = smov 8  }
   0xe   :  { %39 = dma.hbm_to_vmem [thread:$0]  %s543_s1, 384, %s34_s19, [#allocation6], %s486_s21, %s486_s21, %s487_s22  }
   0xf   :  { %s488_s25 = smov [#allocation2]   ;;  %s489_s27 = smov [#allocation7]  }
  0x10   :  { %s21_s26 = sshll.u32 %s488_s25, 4  ;;  %s49_s28 = sshll.u32 %s489_s27, 4  ;;  %s22_s26 = int_to_ptr.vmem [resolvable:$true] %s21_s26  ;;  %s50_s28 = int_to_ptr.vmem [resolvable:$true] %s49_s28 }
  0x11   :  { %s405_s29 = scalar_lea.vmem %s22_s26, 128  ;;  %p410_p6 = scmp.lt.s32.totalorder %s22_s26, %s22_s26 }
  0x12   :  { %p406_p5 = scmp.ne.s32.totalorder %s22_s26, %s405_s29  ;;  %p411_p7 = scmp.lt.s32.totalorder %s405_s29, %s405_s29 }
  0x14   :  { %p412_p8 = por %p411_p7, %p410_p6 }
  0x16   :  { %p413_p9 = pnand %p412_p8, %p406_p5 }
  0x18   :  { %416 = shalt.err (!%p413_p9)
}
  0x19   :  { %24 = dma.hbm_to_vmem [thread:$0]  %s542_s0, 128, %s22_s26, [#allocation3]  }
  0x1a   :  { %s425_s7 = scalar_lea.vmem %s50_s28, 2048  ;;  %p430_p11 = scmp.lt.s32.totalorder %s50_s28, %s50_s28 }
  0x1b   :  { %p426_p10 = scmp.ne.s32.totalorder %s50_s28, %s425_s7  ;;  %p431_p12 = scmp.lt.s32.totalorder %s425_s7, %s425_s7 }
  0x1d   :  { %p432_p13 = por %p431_p12, %p430_p11 }
  0x1f   :  { %p433_p0 = pnand %p432_p13, %p426_p10 }
  0x21   :  { %436 = shalt.err (!%p433_p0)
}
  0x22   :  { %55 = dma.hbm_to_vmem [thread:$0]  %s544_s2, 2048, %s50_s28, [#allocation6], %s486_s21, %s486_s21, %s487_s22  }
  0x23   :  { %477 = dma.done.wait [#allocation3], 128  }
  0x24   :  { %478 = vsyncadd [#allocation3], 4294967168 }
  0x25   :  { %479 = dma.done.wait [#allocation6], 2432  }
  0x26   :  { %480 = vsyncadd [#allocation6], 4294964864  ;;  %v490_v0 = vmov 0.0   ;;  %vm491_vm0 = vmmov 0   ;;  %v92_v1 = vld [vmem:[#allocation5 + $0x10] sm:$0xff]  ;;  %v91_v2 = vld [vmem:[#allocation5 + $0x8] sm:$0xff] }
  0x27   :  { %324 = vmatprep.subr.mxu0 %v490_v0  ;;  %330 = vmatprep.mubr.msk.f32.mxu0 %vm491_vm0, %v490_v0  ;;  %v183_v3 = vld [vmem:[#allocation7 + $0x78] sm:$0xff]  ;;  %v182_v4 = vld [vmem:[#allocation7 + $0x70] sm:$0xff]  ;;  %v90_v5 = vld [vmem:[#allocation5] sm:$0xff]  ;;  %vm93_vm1 = vcmask 195584   ;;  %s492_s9 = smov [#allocation8]   ;;  %s493_s11 = smov [#allocation9]  }
  0x28   :  { %333 = vmatprep.subr.mxu1 %v490_v0  ;;  %365 = vmatprep.mubr.msk.f32.mxu1 %vm491_vm0, %v490_v0  ;;  %v89_v6 = vld [vmem:[#allocation2] sm:$0xff]  ;;  %v181_v7 = vld [vmem:[#allocation7 + $0x68] sm:$0xff]  ;;  %v179_v9 = vld [vmem:[#allocation7 + $0x58] sm:$0xff]  ;;  %s274_s10 = sshll.u32 %s492_s9, 4  ;;  %s284_s12 = sshll.u32 %s493_s11, 4  ;;  %s275_s10 = int_to_ptr.vmem [resolvable:$true] %s274_s10  ;;  %s285_s12 = int_to_ptr.vmem [resolvable:$true] %s284_s12 }
  0x29   :  { %325 = vmatpush3.msra.mxu0 %v92_v1  ;;  %334 = vmatpush3.msra.mxu1 %v183_v3  ;;  %v180_v8 = vld [vmem:[#allocation7 + $0x60] sm:$0xff]  ;;  %v178_v10 = vld [vmem:[#allocation7 + $0x50] sm:$0xff]  ;;  %v177_v11 = vld [vmem:[#allocation7 + $0x48] sm:$0xff]  ;;  %s437_s13 = scalar_lea.vmem %s275_s10, 128  ;;  %p442_p2 = scmp.lt.s32.totalorder %s275_s10, %s275_s10 }
  0x2a   :  { %326 = vmatprep.subr.mxu0 %v490_v0  ;;  %335 = vmatprep.subr.mxu1 %v490_v0  ;;  %v176_v12 = vld [vmem:[#allocation7 + $0x40] sm:$0xff]  ;;  %v175_v13 = vld [vmem:[#allocation7 + $0x38] sm:$0xff]  ;;  %v174_v14 = vld [vmem:[#allocation7 + $0x30] sm:$0xff]  ;;  %p438_p1 = scmp.ne.s32.totalorder %s275_s10, %s437_s13  ;;  %p443_p3 = scmp.lt.s32.totalorder %s437_s13, %s437_s13 }
  0x2b   :  { %327 = vmatpush3.msra.mxu0 %v91_v2  ;;  %336 = vmatpush3.msra.mxu1 %v182_v4  ;;  %v173_v15 = vld [vmem:[#allocation7 + $0x28] sm:$0xff]  ;;  %v172_v16 = vld [vmem:[#allocation7 + $0x20] sm:$0xff]  ;;  %v171_v17 = vld [vmem:[#allocation7 + $0x18] sm:$0xff] }
  0x2c   :  { %328 = vmatprep.subr.mxu0 %v490_v0  ;;  %337 = vmatprep.subr.mxu1 %v490_v0  ;;  %v170_v18 = vld [vmem:[#allocation7 + $0x10] sm:$0xff]  ;;  %v169_v19 = vld [vmem:[#allocation7 + $0x8] sm:$0xff]  ;;  %v168_v20 = vld [vmem:[#allocation7] sm:$0xff]  ;;  %p444_p4 = por %p443_p3, %p442_p2 }
  0x2d   :  { %329 = vmatpush3.msra.mxu0 %v90_v5  ;;  %338 = vmatpush3.msra.mxu1 %v181_v7  ;;  %v302_v24 = vld [vmem:[%s545_s3] ss:$0 sm:$0xff] }
  0x2e   :  { %331 = vmatmul.mubr.msk.f32.vlgmr.msra.gmra.mxu0 %vm93_vm1, %v89_v6  ;;  %339 = vmatprep.subr.mxu1 %v490_v0  ;;  %p445_p5 = pnand %p444_p4, %p438_p1 }
  0x2f   :  { %340 = vmatpush3.msra.mxu1 %v180_v8 }
  0x30   :  { %341 = vmatprep.subr.mxu1 %v490_v0 }
  0x31   :  { %342 = vmatpush3.msra.mxu1 %v179_v9 }
  0x32   :  { %343 = vmatprep.subr.mxu1 %v490_v0 }
  0x33   :  { %344 = vmatpush3.msra.mxu1 %v178_v10 }
  0x34   :  { %345 = vmatprep.subr.mxu1 %v490_v0 }
  0x35   :  { %346 = vmatpush3.msra.mxu1 %v177_v11 }
  0x36   :  { %347 = vmatprep.subr.mxu1 %v490_v0 }
  0x37   :  { %348 = vmatpush3.msra.mxu1 %v176_v12 }
  0x38   :  { %349 = vmatprep.subr.mxu1 %v490_v0 }
  0x39   :  { %350 = vmatpush3.msra.mxu1 %v175_v13 }
  0x3a   :  { %351 = vmatprep.subr.mxu1 %v490_v0 }
  0x3b   :  { %352 = vmatpush3.msra.mxu1 %v174_v14 }
  0x3c   :  { %353 = vmatprep.subr.mxu1 %v490_v0 }
  0x3d   :  { %354 = vmatpush3.msra.mxu1 %v173_v15 }
  0x3e   :  { %355 = vmatprep.subr.mxu1 %v490_v0 }
  0x3f   :  { %356 = vmatpush3.msra.mxu1 %v172_v16 }
  0x40   :  { %357 = vmatprep.subr.mxu1 %v490_v0 }
  0x41   :  { %358 = vmatpush3.msra.mxu1 %v171_v17 }
  0x42   :  { %359 = vmatprep.subr.mxu1 %v490_v0 }
  0x43   :  { %360 = vmatpush3.msra.mxu1 %v170_v18 }
  0x44   :  { %361 = vmatprep.subr.mxu1 %v490_v0 }
  0x45   :  { %362 = vmatpush3.msra.mxu1 %v169_v19 }
  0x46   :  { %363 = vmatprep.subr.mxu1 %v490_v0 }
  0x47   :  { %364 = vmatpush3.msra.mxu1 %v168_v20 }
  0xee   :  { %v163_v21 = vpop.f32.mrf.mxu0 }
  0xef   :  { %v167_v22 = vmax.f32 %v163_v21, 0.0 }
  0xf0   :  { %v332_v23 = vpop.f32.mrf.mxu0 }
  0xf1   :  { %366 = vmatmul.mubr.f32.vlgmr.msra.gmra.mxu1 %v167_v22 }
 0x1b1   :  { %v257_v25 = vpop.f32.mrf.mxu1 }
 0x1b2   :  { %v258_v26 = vadd.f32 %v302_v24, %v257_v25 }
 0x1b3   :  { %v367_v27 = vpop.f32.mrf.mxu1 }
 0x1b4   :  { %v265_v28 = vmul.f32 %v258_v26, %v258_v26  ;;  %263 = vst [vmem:[#allocation8] sm:$0xff] %v258_v26 }
 0x1b5   :  { %448 = shalt.err (!%p445_p5)
}
 0x1b6   :  { %277 = dma.vmem_to_hbm [thread:$0]  %s275_s10, 128, %s546_s4, [#allocation4]   ;;  %267 = vst [vmem:[#allocation9] sm:$0xff] %v265_v28 }
 0x1b7   :  { %s457_s15 = scalar_lea.vmem %s285_s12, 128  ;;  %p462_p7 = scmp.lt.s32.totalorder %s285_s12, %s285_s12 }
 0x1b8   :  { %p458_p6 = scmp.ne.s32.totalorder %s285_s12, %s457_s15  ;;  %p463_p8 = scmp.lt.s32.totalorder %s457_s15, %s457_s15 }
 0x1ba   :  { %p464_p9 = por %p463_p8, %p462_p7 }
 0x1bc   :  { %p465_p10 = pnand %p464_p9, %p458_p6 }
 0x1be   :  { %468 = shalt.err (!%p465_p10)
}
 0x1bf   :  { %287 = dma.vmem_to_hbm [thread:$0]  %s285_s12, 128, %s547_s5, [#allocation10]  }
 0x1c0   :  { %481 = dma.done.wait [#allocation4], 128  }
 0x1c1   :  { %482 = vsyncadd [#allocation4], 4294967168 }
 0x1c2   :  { %483 = dma.done.wait [#allocation10], 128  }
 0x1c3   :  { %484 = vsyncadd [#allocation10], 4294967168 }
 0x1c4   :  { %294 = vsyncpa [#allocation3], 1 }
 0x1c5   :  { %295 = vsyncpa [#allocation6], 1 }
 0x1c6   :  { %296 = vsyncpa [#allocation4], 1 }
 0x1c7   :  { %297 = vsyncpa [#allocation10], 1 }

</bundles_post_ra>
